<compile_context>
chip_gen: v7x
topology: tpu7x:2x2x1
jax: 0.10.0
libtpu: 0.0.40
codegen_flags: <defaults>
</compile_context>

<pallas_src>
import functools

import jax
import jax.numpy as jnp
from jax.experimental import pallas as pl
from jax.experimental.pallas import tpu as pltpu

LATENT_SIZE = 128
HIDDEN_SIZE = 256
OUTPUT_SIZE = 784


def generator_kernel(z_ref, w1_ref, b1_ref, w2_ref, b2_ref, out_ref):
    # Hidden layer: Linear(128 -> 256) + ReLU. bf16 operands on the MXU,
    # f32 accumulation; bias/ReLU in f32 on the VPU.
    z_bf = z_ref[...].astype(jnp.bfloat16)
    h = jnp.dot(z_bf, w1_ref[...], preferred_element_type=jnp.float32)
    h = jnp.maximum(h + b1_ref[...], 0.0)

    # Output layer: Linear(256 -> 784) + Tanh. tanh on the EUP in f32.
    y = jnp.dot(h.astype(jnp.bfloat16), w2_ref[...],
                preferred_element_type=jnp.float32)
    out_ref[...] = jnp.tanh(y + b2_ref[...]).astype(out_ref.dtype)


def prepare_params(w1, b1, w2, b2):
    """One-time prep: cast weights to bf16, reshape biases to (1, N) f32."""
    w1p = w1.astype(jnp.bfloat16)
    b1p = jnp.reshape(b1, (1, HIDDEN_SIZE)).astype(jnp.float32)
    w2p = w2.astype(jnp.bfloat16)
    b2p = jnp.reshape(b2, (1, OUTPUT_SIZE)).astype(jnp.float32)
    return w1p, b1p, w2p, b2p


def _round_up(x, m):
    return ((x + m - 1) // m) * m


@functools.partial(jax.jit, static_argnames=("block_b",))
def generator_forward(z, w1, b1, w2, b2, *, block_b=1024):
    """z: (B, 128) f32. w1/w2 bf16, b1/b2 f32 (1, N) from prepare_params()."""
    batch = z.shape[0]

    # Batch tile: multiple of 16 (bf16 sublane packing), >= 8, <= block_b.
    mult = 16 if batch >= 16 else 8
    tb = min(block_b, _round_up(batch, mult))
    # Guarantee >= 2 grid steps for batch > 8 so the "parallel" axis shards
    # across both TensorCores on v7x.
    if batch > 8:
        tb = min(tb, _round_up(pl.cdiv(batch, 2), mult))
    tb = max(tb, 8)

    padded_b = pl.cdiv(batch, tb) * tb
    if padded_b != batch:
        z = jnp.pad(z, ((0, padded_b - batch), (0, 0)))
    grid = (padded_b // tb,)

    flops = 2 * padded_b * (LATENT_SIZE * HIDDEN_SIZE + HIDDEN_SIZE * OUTPUT_SIZE)
    bytes_accessed = (
        padded_b * LATENT_SIZE * 4                                   # z (f32)
        + (LATENT_SIZE * HIDDEN_SIZE + HIDDEN_SIZE * OUTPUT_SIZE) * 2  # weights (bf16)
        + (HIDDEN_SIZE + OUTPUT_SIZE) * 4                            # biases (f32)
        + padded_b * OUTPUT_SIZE * 4                                 # output (f32)
    )

    out = pl.pallas_call(
        generator_kernel,
        out_shape=jax.ShapeDtypeStruct((padded_b, OUTPUT_SIZE), jnp.float32),
        grid=grid,
        in_specs=[
            # Batch-tiled latent input: pipelined across grid steps.
            pl.BlockSpec((tb, LATENT_SIZE), lambda i: (i, 0)),
            # Weights / biases: constant index_map -> DMA'd once, VMEM-resident.
            pl.BlockSpec((LATENT_SIZE, HIDDEN_SIZE), lambda i: (0, 0)),
            pl.BlockSpec((1, HIDDEN_SIZE), lambda i: (0, 0)),
            pl.BlockSpec((HIDDEN_SIZE, OUTPUT_SIZE), lambda i: (0, 0)),
            pl.BlockSpec((1, OUTPUT_SIZE), lambda i: (0, 0)),
        ],
        out_specs=pl.BlockSpec((tb, OUTPUT_SIZE), lambda i: (i, 0)),
        compiler_params=pltpu.CompilerParams(
            dimension_semantics=("parallel",),   # megacore-shardable batch axis
        ),
        cost_estimate=pl.CostEstimate(
            flops=flops,
            transcendentals=padded_b * OUTPUT_SIZE,
            bytes_accessed=bytes_accessed,
        ),
    )(z, w1, b1, w2, b2)

    if padded_b != batch:
        out = out[:batch]
    return out


def init_params(key):
    # Deterministic synthetic init mimicking PyTorch's Linear default
    # (uniform in +/- 1/sqrt(fan_in)); stored in (in_features, out_features)
    # layout so the kernel computes y = x @ W + b directly.
    k1, k2, k3, k4 = jax.random.split(key, 4)
    bound1 = 1.0 / jnp.sqrt(LATENT_SIZE)
    bound2 = 1.0 / jnp.sqrt(HIDDEN_SIZE)
    w1 = jax.random.uniform(k1, (LATENT_SIZE, HIDDEN_SIZE), jnp.float32,
                            -bound1, bound1)
    b1 = jax.random.uniform(k2, (HIDDEN_SIZE,), jnp.float32, -bound1, bound1)
    w2 = jax.random.uniform(k3, (HIDDEN_SIZE, OUTPUT_SIZE), jnp.float32,
                            -bound2, bound2)
    b2 = jax.random.uniform(k4, (OUTPUT_SIZE,), jnp.float32, -bound2, bound2)
    return w1, b1, w2, b2


if __name__ == "__main__":
    key = jax.random.PRNGKey(0)
    k_params, k_z = jax.random.split(key)

    batch = 8
    z = jax.random.normal(k_z, (batch, LATENT_SIZE), jnp.float32)
    w1, b1, w2, b2 = init_params(k_params)
    w1p, b1p, w2p, b2p = prepare_params(w1, b1, w2, b2)

    out = generator_forward(z, w1p, b1p, w2p, b2p)
    jax.block_until_ready(out)
    assert out.shape == (batch, OUTPUT_SIZE)

    # Reference with the same bf16 quantization of weights/activations the
    # kernel applies (tight tolerance: only accumulation order differs).
    w1q = w1p.astype(jnp.float32)
    w2q = w2p.astype(jnp.float32)
    h_ref = jnp.maximum(
        z.astype(jnp.bfloat16).astype(jnp.float32) @ w1q + b1, 0.0)
    ref_q = jnp.tanh(
        h_ref.astype(jnp.bfloat16).astype(jnp.float32) @ w2q + b2)
    assert jnp.allclose(out, ref_q, atol=1e-2, rtol=1e-2)

    # Coarser sanity check against the original full-f32 module math.
    ref_f32 = jnp.tanh(jnp.maximum(z @ w1 + b1, 0.0) @ w2 + b2)
    assert jnp.max(jnp.abs(out - ref_f32)) < 5e-2

    # Also exercise a multi-step grid (verifies the >=2-step v7x path).
    z_big = jax.random.normal(k_z, (48, LATENT_SIZE), jnp.float32)
    out_big = generator_forward(z_big, w1p, b1p, w2p, b2p)
    jax.block_until_ready(out_big)
    ref_big = jnp.tanh(jnp.maximum(z_big @ w1 + b1, 0.0) @ w2 + b2)
    assert out_big.shape == (48, OUTPUT_SIZE)
    assert jnp.max(jnp.abs(out_big - ref_big)) < 5e-2

    print("KERNEL_OK")
</pallas_src>

<mosaic_0001>
module attributes {stable_mosaic.version = 11 : i64} {
  func.func @generator_kernel(%arg0: i32, %arg1: memref<8x128xf32, #tpu.memory_space<vmem>>, %arg2: memref<128x256xbf16, #tpu.memory_space<vmem>>, %arg3: memref<1x256xf32, #tpu.memory_space<vmem>>, %arg4: memref<256x784xbf16, #tpu.memory_space<vmem>>, %arg5: memref<1x784xf32, #tpu.memory_space<vmem>>, %arg6: memref<8x784xf32, #tpu.memory_space<vmem>>) attributes {dimension_semantics = [#tpu.dimension_semantics<parallel>], iteration_bounds = array<i64: 1>, scalar_prefetch = 0 : i64, scratch_operands = 0 : i64, tpu.core_type = #tpu.core_type<tc>, window_params = [{transform_indices = @transform_0, window_bounds = array<i64: 8, 128>}, {pipeline_mode = #tpu.pipeline_mode<synchronous>, transform_indices = @transform_1, window_bounds = array<i64: 128, 256>}, {pipeline_mode = #tpu.pipeline_mode<synchronous>, transform_indices = @transform_2, window_bounds = array<i64: 1, 256>}, {pipeline_mode = #tpu.pipeline_mode<synchronous>, transform_indices = @transform_3, window_bounds = array<i64: 256, 784>}, {pipeline_mode = #tpu.pipeline_mode<synchronous>, transform_indices = @transform_4, window_bounds = array<i64: 1, 784>}, {transform_indices = @transform_5, window_bounds = array<i64: 8, 784>}]} {
    %c0 = arith.constant 0 : index
    %c0_0 = arith.constant 0 : index
    %0 = vector.load %arg1[%c0, %c0_0] : memref<8x128xf32, #tpu.memory_space<vmem>>, vector<8x128xf32>
    %1 = arith.truncf %0 : vector<8x128xf32> to vector<8x128xbf16>
    %c0_1 = arith.constant 0 : index
    %c0_2 = arith.constant 0 : index
    %2 = vector.load %arg2[%c0_1, %c0_2] : memref<128x256xbf16, #tpu.memory_space<vmem>>, vector<128x256xbf16>
    %cst = arith.constant dense<0.000000e+00> : vector<8x256xf32>
    %3 = tpu.matmul %1, %2, %cst {dimension_numbers = #tpu.dot_dimension_numbers<[1], [0], [0], [1], [0, 0, 1, 1], [], []>} : vector<8x128xbf16>, vector<128x256xbf16>, vector<8x256xf32> -> vector<8x256xf32>
    %c0_3 = arith.constant 0 : index
    %c0_4 = arith.constant 0 : index
    %4 = vector.load %arg3[%c0_3, %c0_4] : memref<1x256xf32, #tpu.memory_space<vmem>>, vector<1x256xf32>
    %5 = vector.broadcast %4 : vector<1x256xf32> to vector<8x256xf32>
    %6 = arith.addf %3, %5 : vector<8x256xf32>
    %cst_5 = arith.constant 0.000000e+00 : f32
    %7 = vector.broadcast %cst_5 : f32 to vector<8x256xf32>
    %8 = arith.maximumf %6, %7 : vector<8x256xf32>
    %9 = arith.truncf %8 : vector<8x256xf32> to vector<8x256xbf16>
    %c0_6 = arith.constant 0 : index
    %c0_7 = arith.constant 0 : index
    %10 = vector.load %arg4[%c0_6, %c0_7] : memref<256x784xbf16, #tpu.memory_space<vmem>>, vector<256x784xbf16>
    %cst_8 = arith.constant dense<0.000000e+00> : vector<8x784xf32>
    %11 = tpu.matmul %9, %10, %cst_8 {dimension_numbers = #tpu.dot_dimension_numbers<[1], [0], [0], [1], [0, 0, 1, 1], [], []>} : vector<8x256xbf16>, vector<256x784xbf16>, vector<8x784xf32> -> vector<8x784xf32>
    %c0_9 = arith.constant 0 : index
    %c0_10 = arith.constant 0 : index
    %12 = vector.load %arg5[%c0_9, %c0_10] : memref<1x784xf32, #tpu.memory_space<vmem>>, vector<1x784xf32>
    %13 = vector.broadcast %12 : vector<1x784xf32> to vector<8x784xf32>
    %14 = arith.addf %11, %13 : vector<8x784xf32>
    %15 = math.tanh %14 : vector<8x784xf32>
    %c0_11 = arith.constant 0 : index
    %c0_12 = arith.constant 0 : index
    %16 = vector.load %arg6[%c0_11, %c0_12] : memref<8x784xf32, #tpu.memory_space<vmem>>, vector<8x784xf32>
    tpu.vector_store %arg6[%c0_11, %c0_12], %15 {strides = array<i32>} : memref<8x784xf32, #tpu.memory_space<vmem>>, vector<8x784xf32>,
    return
  }
  func.func @transform_0(%arg0: i32) -> (i32, i32) {
    %c0_i32 = arith.constant 0 : i32
    %c0_i32_0 = arith.constant 0 : i32
    return %arg0, %c0_i32 : i32, i32
  }
  func.func @transform_1(%arg0: i32) -> (i32, i32) {
    %c0_i32 = arith.constant 0 : i32
    %c0_i32_0 = arith.constant 0 : i32
    %c0_i32_1 = arith.constant 0 : i32
    return %c0_i32, %c0_i32_0 : i32, i32
  }
  func.func @transform_2(%arg0: i32) -> (i32, i32) {
    %c0_i32 = arith.constant 0 : i32
    %c0_i32_0 = arith.constant 0 : i32
    %c0_i32_1 = arith.constant 0 : i32
    return %c0_i32, %c0_i32_0 : i32, i32
  }
  func.func @transform_3(%arg0: i32) -> (i32, i32) {
    %c0_i32 = arith.constant 0 : i32
    %c0_i32_0 = arith.constant 0 : i32
    %c0_i32_1 = arith.constant 0 : i32
    return %c0_i32, %c0_i32_0 : i32, i32
  }
  func.func @transform_4(%arg0: i32) -> (i32, i32) {
    %c0_i32 = arith.constant 0 : i32
    %c0_i32_0 = arith.constant 0 : i32
    %c0_i32_1 = arith.constant 0 : i32
    return %c0_i32, %c0_i32_0 : i32, i32
  }
  func.func @transform_5(%arg0: i32) -> (i32, i32) {
    %c0_i32 = arith.constant 0 : i32
    %c0_i32_0 = arith.constant 0 : i32
    return %arg0, %c0_i32 : i32, i32
  }
}

</mosaic_0001>

<bundles_post_ra>
// kernel: generator_forward.1
= control target key start
LH: loop header
LB: loop body
LE: loop exit
PB: predicated region body
PF: predicated region fallthrough
CT: control target
= control target key end

     0   :  { %v1484_v2 = vmov 0   ;;  %s1944_s0 = inlined_call_operand.vmem [shape: f32[8,128], index: 0, kind: input, shape index: {}]   ;;  %s1945_s1 = inlined_call_operand.vmem [shape: bf16[128,256], index: 1, kind: input, shape index: {}]   ;;  %s1946_s2 = inlined_call_operand.vmem [shape: f32[1,256], index: 2, kind: input, shape index: {}]   ;;  %s1947_s3 = inlined_call_operand.vmem [shape: bf16[256,784], index: 3, kind: input, shape index: {}]   ;;  %s1948_s4 = inlined_call_operand.vmem [shape: f32[1,784], index: 4, kind: input, shape index: {}]   ;;  %s1949_s5 = inlined_call_operand.hbm [shape: f32[8,784], index: 5, kind: output, shape index: {}]  }
   0x1   :  { %v1262_v0 = vld [vmem:[%s1945_s1 + $0x4] ss:$8 sps:$4 sm:$0xff]   ;;  %v1264_v1 = vld [vmem:[%s1945_s1] ss:$8 sps:$4 sm:$0xff]   ;;  %164 = vmatprep.mubr.bf16.mxu0 %v1484_v2  ;;  %v1265_v3 = vld [vmem:[%s1945_s1 + $0x14] ss:$8 sps:$4 sm:$0xff]  }
   0x2   :  { %132 = vmatprep.subr.bf16.mxu0 %v1262_v0  ;;  %v1267_v4 = vld [vmem:[%s1945_s1 + $0x10] ss:$8 sps:$4 sm:$0xff]   ;;  %v1268_v5 = vld [vmem:[%s1945_s1 + $0x24] ss:$8 sps:$4 sm:$0xff]   ;;  %v1270_v6 = vld [vmem:[%s1945_s1 + $0x20] ss:$8 sps:$4 sm:$0xff]  }
   0x3   :  { %133 = vmatpush1.bf16.msra.mxu0 %v1264_v1  ;;  %v1271_v7 = vld [vmem:[%s1945_s1 + $0x34] ss:$8 sps:$4 sm:$0xff]   ;;  %v1273_v8 = vld [vmem:[%s1945_s1 + $0x30] ss:$8 sps:$4 sm:$0xff]   ;;  %v1286_v9 = vld [vmem:[%s1947_s3 + $0x4] ss:$28 sps:$4 sm:$0xff]  }
   0x4   :  { %134 = vmatprep.subr.bf16.mxu0 %v1265_v3  ;;  %v1274_v10 = vld [vmem:[%s1945_s1 + $0x44] ss:$8 sps:$4 sm:$0xff]   ;;  %918 = vmatprep.subr.bf16.mxu1 %v1286_v9  ;;  %v1291_v11 = vld [vmem:[%s1947_s3] ss:$28 sps:$4 sm:$0xff]   ;;  %v1297_v15 = vld [vmem:[%s1947_s3 + $0x38] ss:$28 sps:$4 sm:$0xff]  }
   0x5   :  { %v1292_v12 = vld [vmem:[%s1947_s3 + $0x3c] ss:$28 sps:$4 sm:$0xff]   ;;  %v1276_v13 = vld [vmem:[%s1945_s1 + $0x40] ss:$8 sps:$4 sm:$0xff]   ;;  %919 = vmatpush1.bf16.msra.mxu1 %v1291_v11  ;;  %v1298_v16 = vld [vmem:[%s1947_s3 + $0x74] ss:$28 sps:$4 sm:$0xff]  }
   0x6   :  { %v1277_v14 = vld [vmem:[%s1945_s1 + $0x54] ss:$8 sps:$4 sm:$0xff]   ;;  %920 = vmatprep.subr.bf16.mxu1 %v1292_v12  ;;  %v1279_v17 = vld [vmem:[%s1945_s1 + $0x50] ss:$8 sps:$4 sm:$0xff]   ;;  %v1280_v18 = vld [vmem:[%s1945_s1 + $0x64] ss:$8 sps:$4 sm:$0xff]  }
   0x7   :  { %135 = vmatpush1.bf16.msra.mxu0 %v1267_v4  ;;  %v1303_v19 = vld [vmem:[%s1947_s3 + $0x70] ss:$28 sps:$4 sm:$0xff]   ;;  %v1282_v21 = vld [vmem:[%s1945_s1 + $0x60] ss:$8 sps:$4 sm:$0xff]   ;;  %v1283_v22 = vld [vmem:[%s1945_s1 + $0x74] ss:$8 sps:$4 sm:$0xff]  }
   0x8   :  { %136 = vmatprep.subr.bf16.mxu0 %v1268_v5  ;;  %v1304_v20 = vld [vmem:[%s1947_s3 + $0xac] ss:$28 sps:$4 sm:$0xff]   ;;  %v1310_v24 = vld [vmem:[%s1947_s3 + $0xe4] ss:$28 sps:$4 sm:$0xff]   ;;  %v1285_v25 = vld [vmem:[%s1945_s1 + $0x70] ss:$8 sps:$4 sm:$0xff]  }
   0x9   :  { %921 = vmatpush1.bf16.msra.mxu1 %v1297_v15  ;;  %v1309_v23 = vld [vmem:[%s1947_s3 + $0xa8] ss:$28 sps:$4 sm:$0xff]   ;;  %v1315_v28 = vld [vmem:[%s1947_s3 + $0xe0] ss:$28 sps:$4 sm:$0xff]   ;;  %v1321_v33 = vld [vmem:[%s1947_s3 + $0x118] ss:$28 sps:$4 sm:$0xff]  }
   0xa   :  { %922 = vmatprep.subr.bf16.mxu1 %v1298_v16  ;;  %v22_v26 = vld [vmem:[%s1944_s0] sm:$0xff]  ;;  %v1290_v27 = vld [vmem:[%s1947_s3 + $0xc] ss:$28 sps:$4 sm:$0xff]   ;;  %v1316_v29 = vld [vmem:[%s1947_s3 + $0x11c] ss:$28 sps:$4 sm:$0xff]  }
   0xb   :  { %137 = vmatpush1.bf16.msra.mxu0 %v1270_v6  ;;  %v23_v30 = vpack.c.bf16 %v22_v26, %v22_v26  ;;  %v1288_v31 = vld [vmem:[%s1947_s3 + $0x8] ss:$28 sps:$4 sm:$0xff]   ;;  %v1322_v34 = vld [vmem:[%s1947_s3 + $0x154] ss:$28 sps:$4 sm:$0xff]   ;;  %v1294_v35 = vld [vmem:[%s1947_s3 + $0x40] ss:$28 sps:$4 sm:$0xff]  }
   0xc   :  { %138 = vmatprep.subr.bf16.mxu0 %v1271_v7  ;;  %v1296_v32 = vld [vmem:[%s1947_s3 + $0x44] ss:$28 sps:$4 sm:$0xff]   ;;  %v1302_v36 = vld [vmem:[%s1947_s3 + $0x7c] ss:$28 sps:$4 sm:$0xff]   ;;  %v1327_v37 = vld [vmem:[%s1947_s3 + $0x150] ss:$28 sps:$4 sm:$0xff]  }
   0xd   :  { %923 = vmatpush1.bf16.msra.mxu1 %v1303_v19  ;;  %v1328_v38 = vld [vmem:[%s1947_s3 + $0x18c] ss:$28 sps:$4 sm:$0xff]   ;;  %v1300_v39 = vld [vmem:[%s1947_s3 + $0x78] ss:$28 sps:$4 sm:$0xff]   ;;  %v1334_v42 = vld [vmem:[%s1947_s3 + $0x1c4] ss:$28 sps:$4 sm:$0xff]  }
   0xe   :  { %924 = vmatprep.subr.bf16.mxu1 %v1304_v20  ;;  %v1308_v40 = vld [vmem:[%s1947_s3 + $0xb4] ss:$28 sps:$4 sm:$0xff]   ;;  %v1333_v41 = vld [vmem:[%s1947_s3 + $0x188] ss:$28 sps:$4 sm:$0xff]   ;;  %v1339_v45 = vld [vmem:[%s1947_s3 + $0x1c0] ss:$28 sps:$4 sm:$0xff]  }
   0xf   :  { %139 = vmatpush1.bf16.msra.mxu0 %v1273_v8  ;;  %v1306_v43 = vld [vmem:[%s1947_s3 + $0xb0] ss:$28 sps:$4 sm:$0xff]   ;;  %v1340_v46 = vld [vmem:[%s1947_s3 + $0x1fc] ss:$28 sps:$4 sm:$0xff]   ;;  %v1312_v47 = vld [vmem:[%s1947_s3 + $0xe8] ss:$28 sps:$4 sm:$0xff]  }
  0x10   :  { %140 = vmatprep.subr.bf16.mxu0 %v1274_v10  ;;  %v1314_v44 = vld [vmem:[%s1947_s3 + $0xec] ss:$28 sps:$4 sm:$0xff]   ;;  %v1345_v48 = vld [vmem:[%s1947_s3 + $0x1f8] ss:$28 sps:$4 sm:$0xff]   ;;  %v1320_v49 = vld [vmem:[%s1947_s3 + $0x124] ss:$28 sps:$4 sm:$0xff]  }
  0x11   :  { %925 = vmatpush1.bf16.msra.mxu1 %v1309_v23  ;;  %v1346_v50 = vld [vmem:[%s1947_s3 + $0x234] ss:$28 sps:$4 sm:$0xff]   ;;  %v1318_v51 = vld [vmem:[%s1947_s3 + $0x120] ss:$28 sps:$4 sm:$0xff]   ;;  %v1352_v54 = vld [vmem:[%s1947_s3 + $0x26c] ss:$28 sps:$4 sm:$0xff]  }
  0x12   :  { %926 = vmatprep.subr.bf16.mxu1 %v1310_v24  ;;  %v1351_v52 = vld [vmem:[%s1947_s3 + $0x230] ss:$28 sps:$4 sm:$0xff]   ;;  %v1326_v53 = vld [vmem:[%s1947_s3 + $0x15c] ss:$28 sps:$4 sm:$0xff]   ;;  %v1357_v56 = vld [vmem:[%s1947_s3 + $0x268] ss:$28 sps:$4 sm:$0xff]  }
  0x13   :  { %141 = vmatpush1.bf16.msra.mxu0 %v1276_v13  ;;  %v1324_v55 = vld [vmem:[%s1947_s3 + $0x158] ss:$28 sps:$4 sm:$0xff]   ;;  %v1358_v58 = vld [vmem:[%s1947_s3 + $0x2a4] ss:$28 sps:$4 sm:$0xff]   ;;  %v1330_v59 = vld [vmem:[%s1947_s3 + $0x190] ss:$28 sps:$4 sm:$0xff]  }
  0x14   :  { %142 = vmatprep.subr.bf16.mxu0 %v1277_v14  ;;  %v1332_v57 = vld [vmem:[%s1947_s3 + $0x194] ss:$28 sps:$4 sm:$0xff]   ;;  %v1363_v60 = vld [vmem:[%s1947_s3 + $0x2a0] ss:$28 sps:$4 sm:$0xff]   ;;  %v1338_v61 = vld [vmem:[%s1947_s3 + $0x1cc] ss:$28 sps:$4 sm:$0xff]  }
  0x15   :  { %927 = vmatpush1.bf16.msra.mxu1 %v1315_v28  ;;  %v1364_v62 = vld [vmem:[%s1947_s3 + $0x2dc] ss:$28 sps:$4 sm:$0xff]   ;;  %v1336_v63 = vld [vmem:[%s1947_s3 + $0x1c8] ss:$28 sps:$4 sm:$0xff]   ;;  %v1356_v5 = vld [vmem:[%s1947_s3 + $0x274] ss:$28 sps:$4 sm:$0xff]  }
  0x16   :  { %928 = vmatprep.subr.bf16.mxu1 %v1316_v29  ;;  %v1369_v0 = vld [vmem:[%s1947_s3 + $0x2d8] ss:$28 sps:$4 sm:$0xff]   ;;  %v1344_v1 = vld [vmem:[%s1947_s3 + $0x204] ss:$28 sps:$4 sm:$0xff]  }
  0x17   :  { %143 = vmatpush1.bf16.msra.mxu0 %v1279_v17  ;;  %v1342_v2 = vld [vmem:[%s1947_s3 + $0x200] ss:$28 sps:$4 sm:$0xff]   ;;  %v1348_v4 = vld [vmem:[%s1947_s3 + $0x238] ss:$28 sps:$4 sm:$0xff]  }
  0x18   :  { %144 = vmatprep.subr.bf16.mxu0 %v1280_v18  ;;  %v1350_v3 = vld [vmem:[%s1947_s3 + $0x23c] ss:$28 sps:$4 sm:$0xff]  }
  0x19   :  { %929 = vmatpush1.bf16.msra.mxu1 %v1321_v33 }
  0x1a   :  { %930 = vmatprep.subr.bf16.mxu1 %v1322_v34 }
  0x1b   :  { %145 = vmatpush1.bf16.msra.mxu0 %v1282_v21 }
  0x1c   :  { %146 = vmatprep.subr.bf16.mxu0 %v1283_v22 }
  0x1d   :  { %931 = vmatpush1.bf16.msra.mxu1 %v1327_v37 }
  0x1e   :  { %932 = vmatprep.subr.bf16.mxu1 %v1328_v38 }
  0x1f   :  { %147 = vmatpush1.bf16.msra.mxu0 %v1285_v25 }
  0x20   :  { %959 = vmatprep.subr.bf16.mxu0 %v1290_v27 }
  0x21   :  { %933 = vmatpush1.bf16.msra.mxu1 %v1333_v41 }
  0x22   :  { %165 = vmatmul.mubr.bf16.vlgmr.msra.gmra.mrb[0].mxu0 %v23_v30  ;;  %934 = vmatprep.subr.bf16.mxu1 %v1334_v42 }
  0x23   :  { %960 = vmatpush1.bf16.msra.mxu0 %v1288_v31 }
  0x24   :  { %961 = vmatprep.subr.bf16.mxu0 %v1296_v32 }
  0x25   :  { %935 = vmatpush1.bf16.msra.mxu1 %v1339_v45 }
  0x26   :  { %936 = vmatprep.subr.bf16.mxu1 %v1340_v46 }
  0x27   :  { %962 = vmatpush1.bf16.msra.mxu0 %v1294_v35 }
  0x28   :  { %963 = vmatprep.subr.bf16.mxu0 %v1302_v36 }
  0x29   :  { %937 = vmatpush1.bf16.msra.mxu1 %v1345_v48 }
  0x2a   :  { %938 = vmatprep.subr.bf16.mxu1 %v1346_v50 }
  0x2b   :  { %964 = vmatpush1.bf16.msra.mxu0 %v1300_v39 }
  0x2c   :  { %965 = vmatprep.subr.bf16.mxu0 %v1308_v40 }
  0x2d   :  { %939 = vmatpush1.bf16.msra.mxu1 %v1351_v52 }
  0x2e   :  { %940 = vmatprep.subr.bf16.mxu1 %v1352_v54 }
  0x2f   :  { %966 = vmatpush1.bf16.msra.mxu0 %v1306_v43 }
  0x30   :  { %967 = vmatprep.subr.bf16.mxu0 %v1314_v44 }
  0x31   :  { %941 = vmatpush1.bf16.msra.mxu1 %v1357_v56 }
  0x32   :  { %942 = vmatprep.subr.bf16.mxu1 %v1358_v58 }
  0x33   :  { %968 = vmatpush1.bf16.msra.mxu0 %v1312_v47 }
  0x34   :  { %969 = vmatprep.subr.bf16.mxu0 %v1320_v49 }
  0x35   :  { %943 = vmatpush1.bf16.msra.mxu1 %v1363_v60 }
  0x36   :  { %944 = vmatprep.subr.bf16.mxu1 %v1364_v62 }
  0x37   :  { %970 = vmatpush1.bf16.msra.mxu0 %v1318_v51 }
  0x38   :  { %971 = vmatprep.subr.bf16.mxu0 %v1326_v53 }
  0x39   :  { %945 = vmatpush1.bf16.msra.mxu1 %v1369_v0 }
  0x3b   :  { %972 = vmatpush1.bf16.msra.mxu0 %v1324_v55 }
  0x3c   :  { %973 = vmatprep.subr.bf16.mxu0 %v1332_v57 }
  0x3f   :  { %974 = vmatpush1.bf16.msra.mxu0 %v1330_v59 }
  0x40   :  { %975 = vmatprep.subr.bf16.mxu0 %v1338_v61 }
  0x43   :  { %976 = vmatpush1.bf16.msra.mxu0 %v1336_v63 }
  0x44   :  { %977 = vmatprep.subr.bf16.mxu0 %v1344_v1 }
  0x47   :  { %978 = vmatpush1.bf16.msra.mxu0 %v1342_v2 }
  0x48   :  { %979 = vmatprep.subr.bf16.mxu0 %v1350_v3 }
  0x49   :  { %10 = vsyncpa [#allocation3], 0  ;;  %v1354_v6 = vld [vmem:[%s1947_s3 + $0x270] ss:$28 sps:$4 sm:$0xff]   ;;  %v1360_v8 = vld [vmem:[%s1947_s3 + $0x2a8] ss:$28 sps:$4 sm:$0xff]   ;;  %v42_v21 = vlaneseq }
  0x4a   :  { %v1362_v7 = vld [vmem:[%s1947_s3 + $0x2ac] ss:$28 sps:$4 sm:$0xff]   ;;  %v1368_v9 = vld [vmem:[%s1947_s3 + $0x2e4] ss:$28 sps:$4 sm:$0xff]   ;;  %v1370_v11 = vld [vmem:[%s1947_s3 + $0x314] ss:$28 sps:$4 sm:$0xff]  }
  0x4b   :  { %980 = vmatpush1.bf16.msra.mxu0 %v1348_v4  ;;  %v1366_v10 = vld [vmem:[%s1947_s3 + $0x2e0] ss:$28 sps:$4 sm:$0xff]   ;;  %v1372_v13 = vld [vmem:[%s1947_s3 + $0x318] ss:$28 sps:$4 sm:$0xff]   ;;  %v1375_v14 = vld [vmem:[%s1947_s3 + $0x310] ss:$28 sps:$4 sm:$0xff]   ;;  %946 = vmatprep.subr.bf16.mxu1 %v1370_v11 }
  0x4c   :  { %981 = vmatprep.subr.bf16.mxu0 %v1356_v5  ;;  %v1374_v12 = vld [vmem:[%s1947_s3 + $0x31c] ss:$28 sps:$4 sm:$0xff]   ;;  %947 = vmatpush1.bf16.msra.mxu1 %v1375_v14  ;;  %v1376_v15 = vld [vmem:[%s1947_s3 + $0x34c] ss:$28 sps:$4 sm:$0xff]   ;;  %v1380_v16 = vld [vmem:[%s1947_s3 + $0x354] ss:$28 sps:$4 sm:$0xff]  }
  0x4d   :  { %v1378_v17 = vld [vmem:[%s1947_s3 + $0x350] ss:$28 sps:$4 sm:$0xff]   ;;  %v1381_v18 = vld [vmem:[%s1947_s3 + $0x348] ss:$28 sps:$4 sm:$0xff]   ;;  %948 = vmatprep.subr.bf16.mxu1 %v1376_v15  ;;  %v1385_v20 = vld [vmem:[%s1947_s3 + $0x1d8] ss:$28 sps:$4 sm:$0xff]  }
  0x4e   :  { %v1384_v19 = vld [vmem:[%s1947_s3 + $0x14] ss:$28 sps:$4 sm:$0xff]   ;;  %v1765_v22 = vshrl.u32 %v42_v21, 7  ;;  %v40_v24 = vld [vmem:[%s1946_s2] sm:$0x3]  ;;  %vm1094_vm0 = vcmask 130048  }
  0x4f   :  { %982 = vmatpush1.bf16.msra.mxu0 %v1354_v6  ;;  %v1382_v37 = vld [vmem:[%s1947_s3 + $0x10] ss:$28 sps:$4 sm:$0xff]   ;;  %v1386_v38 = vld [vmem:[%s1947_s3 + $0x18] ss:$28 sps:$4 sm:$0xff]   ;;  %v1387_v42 = vld [vmem:[%s1947_s3 + $0x48] ss:$28 sps:$4 sm:$0xff]  }
  0x50   :  { %983 = vmatprep.subr.bf16.mxu0 %v1362_v7  ;;  %949 = vmatpush1.bf16.msra.mxu1 %v1381_v18  ;;  %v44_v23 = vsub.s32 0, %v1765_v22  ;;  %v48_v25 = vsub.s32 1, %v1765_v22  ;;  %v1389_v40 = vld [vmem:[%s1947_s3 + $0x4c] ss:$28 sps:$4 sm:$0xff]   ;;  %v1394_v44 = vld [vmem:[%s1947_s3 + $0x84] ss:$28 sps:$4 sm:$0xff]  }
  0x51   :  { %1000 = vmatprep.subr.bf16.mxu1 %v1384_v19  ;;  %v1390_v41 = vld [vmem:[%s1947_s3 + $0x210] ss:$28 sps:$4 sm:$0xff]   ;;  %v1395_v45 = vld [vmem:[%s1947_s3 + $0x248] ss:$28 sps:$4 sm:$0xff]   ;;  %v1392_v46 = vld [vmem:[%s1947_s3 + $0x80] ss:$28 sps:$4 sm:$0xff]  }
  0x52   :  { %v45_v26 = vrot.slane %v40_v24, %v44_v23  ;;  %v49_v27 = vrot.slane %v40_v24, %v48_v25  ;;  %v1391_v43 = vld [vmem:[%s1947_s3 + $0x50] ss:$28 sps:$4 sm:$0xff]   ;;  %v1396_v47 = vld [vmem:[%s1947_s3 + $0x88] ss:$28 sps:$4 sm:$0xff]   ;;  %v1399_v48 = vld [vmem:[%s1947_s3 + $0xbc] ss:$28 sps:$4 sm:$0xff]  }
  0x53   :  { %984 = vmatpush1.bf16.msra.mxu0 %v1360_v8  ;;  %v1400_v49 = vld [vmem:[%s1947_s3 + $0x280] ss:$28 sps:$4 sm:$0xff]   ;;  %v1397_v50 = vld [vmem:[%s1947_s3 + $0xb8] ss:$28 sps:$4 sm:$0xff]   ;;  %v1402_v54 = vld [vmem:[%s1947_s3 + $0xf0] ss:$28 sps:$4 sm:$0xff]  }
  0x54   :  { %985 = vmatprep.subr.bf16.mxu0 %v1368_v9  ;;  %v1401_v51 = vld [vmem:[%s1947_s3 + $0xc0] ss:$28 sps:$4 sm:$0xff]   ;;  %v1404_v52 = vld [vmem:[%s1947_s3 + $0xf4] ss:$28 sps:$4 sm:$0xff]   ;;  %v1409_v56 = vld [vmem:[%s1947_s3 + $0x12c] ss:$28 sps:$4 sm:$0xff]  }
  0x55   :  { %v1405_v53 = vld [vmem:[%s1947_s3 + $0x2b8] ss:$28 sps:$4 sm:$0xff]   ;;  %v1410_v57 = vld [vmem:[%s1947_s3 + $0x2f0] ss:$28 sps:$4 sm:$0xff]   ;;  %v1407_v58 = vld [vmem:[%s1947_s3 + $0x128] ss:$28 sps:$4 sm:$0xff]  }
  0x56   :  { %v1406_v55 = vld [vmem:[%s1947_s3 + $0xf8] ss:$28 sps:$4 sm:$0xff]   ;;  %v1411_v59 = vld [vmem:[%s1947_s3 + $0x130] ss:$28 sps:$4 sm:$0xff]   ;;  %v1414_v60 = vld [vmem:[%s1947_s3 + $0x164] ss:$28 sps:$4 sm:$0xff]  }
  0x57   :  { %986 = vmatpush1.bf16.msra.mxu0 %v1366_v10  ;;  %v1415_v61 = vld [vmem:[%s1947_s3 + $0x328] ss:$28 sps:$4 sm:$0xff]   ;;  %v1412_v62 = vld [vmem:[%s1947_s3 + $0x160] ss:$28 sps:$4 sm:$0xff]   ;;  %v1417_v2 = vld [vmem:[%s1947_s3 + $0x198] ss:$28 sps:$4 sm:$0xff]  }
  0x58   :  { %987 = vmatprep.subr.bf16.mxu0 %v1374_v12  ;;  %v1416_v63 = vld [vmem:[%s1947_s3 + $0x168] ss:$28 sps:$4 sm:$0xff]   ;;  %v1419_v0 = vld [vmem:[%s1947_s3 + $0x19c] ss:$28 sps:$4 sm:$0xff]   ;;  %v1424_v4 = vld [vmem:[%s1947_s3 + $0x1d4] ss:$28 sps:$4 sm:$0xff]  }
  0x59   :  { %v1420_v1 = vld [vmem:[%s1947_s3 + $0x360] ss:$28 sps:$4 sm:$0xff]   ;;  %v1422_v5 = vld [vmem:[%s1947_s3 + $0x1d0] ss:$28 sps:$4 sm:$0xff]   ;;  %v1425_v7 = vld [vmem:[%s1947_s3 + $0x208] ss:$28 sps:$4 sm:$0xff]  }
  0x5a   :  { %v1421_v3 = vld [vmem:[%s1947_s3 + $0x1a0] ss:$28 sps:$4 sm:$0xff]   ;;  %v1427_v6 = vld [vmem:[%s1947_s3 + $0x20c] ss:$28 sps:$4 sm:$0xff]   ;;  %v1431_v11 = vld [vmem:[%s1947_s3 + $0x278] ss:$28 sps:$4 sm:$0xff]  }
  0x5b   :  { %988 = vmatpush1.bf16.msra.mxu0 %v1372_v13  ;;  %v1430_v8 = vld [vmem:[%s1947_s3 + $0x244] ss:$28 sps:$4 sm:$0xff]   ;;  %v1433_v10 = vld [vmem:[%s1947_s3 + $0x27c] ss:$28 sps:$4 sm:$0xff]   ;;  %v1436_v12 = vld [vmem:[%s1947_s3 + $0x2b4] ss:$28 sps:$4 sm:$0xff]  }
  0x5c   :  { %989 = vmatprep.subr.bf16.mxu0 %v1380_v16  ;;  %v1428_v9 = vld [vmem:[%s1947_s3 + $0x240] ss:$28 sps:$4 sm:$0xff]   ;;  %v1434_v13 = vld [vmem:[%s1947_s3 + $0x2b0] ss:$28 sps:$4 sm:$0xff]   ;;  %v1437_v15 = vld [vmem:[%s1947_s3 + $0x2e8] ss:$28 sps:$4 sm:$0xff]  }
  0x5d   :  { %v1439_v14 = vld [vmem:[%s1947_s3 + $0x2ec] ss:$28 sps:$4 sm:$0xff]   ;;  %v1442_v16 = vld [vmem:[%s1947_s3 + $0x324] ss:$28 sps:$4 sm:$0xff]   ;;  %v1445_v18 = vld [vmem:[%s1947_s3 + $0x35c] ss:$28 sps:$4 sm:$0xff]  }
  0x5e   :  { %v1443_v19 = vld [vmem:[%s1947_s3 + $0x358] ss:$28 sps:$4 sm:$0xff]   ;;  %v305_v21 = vld [vmem:[%s1948_s4] sm:$0x7f]  ;;  %v321_v24 = vsub.s32 3, %v1765_v22 }
  0x5f   :  { %990 = vmatpush1.bf16.msra.mxu0 %v1378_v17  ;;  %v1440_v17 = vld [vmem:[%s1947_s3 + $0x320] ss:$28 sps:$4 sm:$0xff]   ;;  %s1485_s3 = smov [#allocation2]  }
  0x60   :  { %1238 = vmatprep.subr.bf16.mxu0 %v1385_v20  ;;  %v317_v20 = vsub.s32 2, %v1765_v22  ;;  %s1102_s4 = sshll.u32 %s1485_s3, 4  ;;  %s1103_s4 = int_to_ptr.vmem [resolvable:$true] %s1102_s4 }
  0x61   :  { %s1460_s10 = scalar_lea.vmem %s1103_s4, 896  ;;  %p1465_p1 = scmp.lt.s32.totalorder %s1103_s4, %s1103_s4 }
  0x62   :  { %p1461_p0 = scmp.ne.s32.totalorder %s1103_s4, %s1460_s10  ;;  %p1466_p2 = scmp.lt.s32.totalorder %s1460_s10, %s1460_s10 }
  0x64   :  { %p1467_p3 = por %p1466_p2, %p1465_p1 }
  0x66   :  { %p1468_p4 = pnand %p1467_p3, %p1461_p0 }
  0xf5   :  { %v166_v28 = vpop.f32.mrb[0].mxu0 }
  0xf6   :  { %v167_v29 = vadd.f32 %v166_v28, %v45_v26  ;;  %v168_v30 = vpop.f32.mrb[1].mxu0  ;;  %v310_v26 = vrot.slane %v305_v21, %v44_v23  ;;  %v314_v28 = vrot.slane %v305_v21, %v48_v25 }
  0xf7   :  { %v169_v31 = vadd.f32 %v168_v30, %v49_v27  ;;  %v170_v32 = vpop.f32.mrb[2].mxu0  ;;  %v318_v27 = vrot.slane %v305_v21, %v317_v20 }
  0xf8   :  { %v173_v33 = vmax.f32 %v167_v29, 0.0  ;;  %v171_v34 = vpop.f32.mrb[3].mxu0  ;;  %v322_v29 = vrot.slane %v305_v21, %v321_v24 }
  0xf9   :  { %v174_v35 = vmax.f32 %v169_v31, 0.0 }
  0xfa   :  { %v1782_v39 = vpack.c.bf16 %v173_v33, %v173_v33 }
  0xfb   :  { %v176_v36 = vpack.c.bf16 %v174_v35, %v174_v35 }
  0xfd   :  { %950 = vmatprep.mubr.bf16.mxu1 %v176_v36  ;;  %991 = vmatprep.mubr.bf16.mxu0 %v176_v36 }
  0xfe   :  { %951 = vmatmul.mubr.bf16.vlgmr.msra.gmra.mrb[0].mxu1 %v1782_v39  ;;  %992 = vmatmul.mubr.bf16.vlgmr.msra.gmra.mrb[4].mxu0 %v1782_v39 }
  0xff   :  { %1001 = vmatpush1.bf16.msra.mxu1 %v1382_v37  ;;  %1239 = vmatpush3.bf16.msra.mxu0 %v1386_v38 }
 0x100   :  { %1032 = vmatprep.mubr.bf16.mxu1 %v176_v36  ;;  %1073 = vmatprep.mubr.bf16.mxu0 %v176_v36 }
 0x101   :  { %1002 = vmatprep.subr.bf16.mxu1 %v1389_v40  ;;  %1240 = vmatprep.subr.bf16.mxu0 %v1390_v41 }
 0x103   :  { %1003 = vmatpush1.bf16.msra.mxu1 %v1387_v42  ;;  %1241 = vmatpush3.bf16.msra.mxu0 %v1391_v43 }
 0x104   :  { %1004 = vmatprep.subr.bf16.mxu1 %v1394_v44  ;;  %1242 = vmatprep.subr.bf16.mxu0 %v1395_v45  ;;  %v333_v44 = vsub.s32 6, %v1765_v22 }
 0x107   :  { %1005 = vmatpush1.bf16.msra.mxu1 %v1392_v46  ;;  %1243 = vmatpush3.bf16.msra.mxu0 %v1396_v47  ;;  %v334_v46 = vrot.slane %v305_v21, %v333_v44 }
 0x108   :  { %1006 = vmatprep.subr.bf16.mxu1 %v1399_v48  ;;  %1244 = vmatprep.subr.bf16.mxu0 %v1400_v49 }
 0x10b   :  { %1007 = vmatpush1.bf16.msra.mxu1 %v1397_v50  ;;  %1245 = vmatpush3.bf16.msra.mxu0 %v1401_v51 }
 0x10c   :  { %1008 = vmatprep.subr.bf16.mxu1 %v1404_v52  ;;  %1246 = vmatprep.subr.bf16.mxu0 %v1405_v53  ;;  %v325_v53 = vsub.s32 4, %v1765_v22 }
 0x10f   :  { %1009 = vmatpush1.bf16.msra.mxu1 %v1402_v54  ;;  %1247 = vmatpush3.bf16.msra.mxu0 %v1406_v55  ;;  %v329_v54 = vsub.s32 5, %v1765_v22  ;;  %v326_v55 = vrot.slane %v305_v21, %v325_v53 }
 0x110   :  { %1010 = vmatprep.subr.bf16.mxu1 %v1409_v56  ;;  %1248 = vmatprep.subr.bf16.mxu0 %v1410_v57 }
 0x111   :  { %v330_v56 = vrot.slane %v305_v21, %v329_v54 }
 0x113   :  { %1011 = vmatpush1.bf16.msra.mxu1 %v1407_v58  ;;  %1249 = vmatpush3.bf16.msra.mxu0 %v1411_v59 }
 0x114   :  { %1012 = vmatprep.subr.bf16.mxu1 %v1414_v60  ;;  %1250 = vmatprep.subr.bf16.mxu0 %v1415_v61 }
 0x117   :  { %1013 = vmatpush1.bf16.msra.mxu1 %v1412_v62  ;;  %1251 = vmatpush3.bf16.msra.mxu0 %v1416_v63 }
 0x118   :  { %1014 = vmatprep.subr.bf16.mxu1 %v1419_v0  ;;  %1252 = vmatprep.subr.bf16.mxu0 %v1420_v1 }
 0x11b   :  { %1015 = vmatpush1.bf16.msra.mxu1 %v1417_v2  ;;  %1253 = vmatpush3.bf16.msra.mxu0 %v1421_v3 }
 0x11c   :  { %1016 = vmatprep.subr.bf16.mxu1 %v1424_v4 }
 0x11e   :  { %1074 = vmatmul.mubr.bf16.vlgmr.msra.gmra.mrb[8].mxu0 %v1782_v39 }
 0x11f   :  { %1017 = vmatpush1.bf16.msra.mxu1 %v1422_v5 }
 0x120   :  { %1018 = vmatprep.subr.bf16.mxu1 %v1427_v6 }
 0x123   :  { %1019 = vmatpush1.bf16.msra.mxu1 %v1425_v7 }
 0x124   :  { %1020 = vmatprep.subr.bf16.mxu1 %v1430_v8 }
 0x127   :  { %1021 = vmatpush1.bf16.msra.mxu1 %v1428_v9 }
 0x128   :  { %1022 = vmatprep.subr.bf16.mxu1 %v1433_v10 }
 0x12b   :  { %1023 = vmatpush1.bf16.msra.mxu1 %v1431_v11 }
 0x12c   :  { %1024 = vmatprep.subr.bf16.mxu1 %v1436_v12 }
 0x12f   :  { %1025 = vmatpush1.bf16.msra.mxu1 %v1434_v13 }
 0x130   :  { %1026 = vmatprep.subr.bf16.mxu1 %v1439_v14 }
 0x133   :  { %1027 = vmatpush1.bf16.msra.mxu1 %v1437_v15 }
 0x134   :  { %1028 = vmatprep.subr.bf16.mxu1 %v1442_v16 }
 0x137   :  { %1029 = vmatpush1.bf16.msra.mxu1 %v1440_v17 }
 0x138   :  { %1030 = vmatprep.subr.bf16.mxu1 %v1445_v18 }
 0x13b   :  { %1031 = vmatpush1.bf16.msra.mxu1 %v1443_v19 }
 0x13e   :  { %1033 = vmatmul.mubr.bf16.vlgmr.msra.gmra.mrb[4].mxu1 %v1782_v39 }
 0x1d1   :  { %v952_v30 = vpop.f32.mrb[0].mxu1  ;;  %v993_v31 = vpop.f32.mrb[4].mxu0 }
 0x1d2   :  { %v953_v32 = vadd.f32 %v952_v30, %v310_v26  ;;  %v994_v33 = vadd.f32 %v993_v31, %v318_v27  ;;  %v954_v34 = vpop.f32.mrb[1].mxu1  ;;  %v995_v35 = vpop.f32.mrb[5].mxu0 }
 0x1d3   :  { %v955_v36 = vadd.f32 %v954_v34, %v314_v28  ;;  %v996_v37 = vadd.f32 %v995_v35, %v322_v29  ;;  %v956_v38 = vpop.f32.mrb[2].mxu1  ;;  %v997_v39 = vpop.f32.mrb[6].mxu0 }
 0x1d4   :  { %1446 = vtanh.f32 %v953_v32  ;;  %v957_v40 = vpop.f32.mrb[3].mxu1  ;;  %v998_v41 = vpop.f32.mrb[7].mxu0 }
 0x1d5   :  { %1448 = vtanh.f32 %v994_v33 }
 0x1d6   :  { %1450 = vtanh.f32 %v955_v36 }
 0x1d7   :  { %1452 = vtanh.f32 %v996_v37 }
 0x1de   :  { %v1447_v23 = vpop.eup %1446 }
 0x1df   :  { %v1449_v42 = vpop.eup %1448  ;;  %1088 = vst [vmem:[#allocation2] sm:$0xff] %v1447_v23 }
 0x1e0   :  { %v1451_v25 = vpop.eup %1450  ;;  %1090 = vst [vmem:[#allocation2 + $0x10] sm:$0xff] %v1449_v42 }
 0x1e1   :  { %v1453_v43 = vpop.eup %1452  ;;  %1089 = vst [vmem:[#allocation2 + $0x8] sm:$0xff] %v1451_v25 }
 0x1e2   :  { %1091 = vst [vmem:[#allocation2 + $0x18] sm:$0xff] %v1453_v43 }
 0x1f1   :  { %v1254_v45 = vpop.f32.mrb[8].mxu0 }
 0x1f2   :  { %v1255_v47 = vpop.f32.mrb[9].mxu0 }
 0x1f3   :  { %v1256_v48 = vadd.f32 %v1255_v47, %v1254_v45  ;;  %v1257_v49 = vpop.f32.mrb[10].mxu0 }
 0x1f4   :  { %v1258_v50 = vpop.f32.mrb[11].mxu0 }
 0x1f5   :  { %v1076_v51 = vadd.f32 %v1256_v48, %v334_v46 }
 0x1f7   :  { %1454 = vtanh.f32 %v1076_v51 }
 0x201   :  { %v1455_v52 = vpop.eup %1454 }
 0x202   :  { %1095 = vst.msk [vmem:[#allocation2 + $0x30] sm:$0xff] %vm1094_vm0, %v1455_v52 }
 0x211   :  { %v1034_v57 = vpop.f32.mrb[4].mxu1 }
 0x212   :  { %v1035_v58 = vadd.f32 %v1034_v57, %v326_v55  ;;  %v1036_v59 = vpop.f32.mrb[5].mxu1 }
 0x213   :  { %v1037_v60 = vadd.f32 %v1036_v59, %v330_v56  ;;  %v1038_v61 = vpop.f32.mrb[6].mxu1 }
 0x214   :  { %1456 = vtanh.f32 %v1035_v58  ;;  %v1039_v62 = vpop.f32.mrb[7].mxu1 }
 0x215   :  { %1458 = vtanh.f32 %v1037_v60 }
 0x21e   :  { %v1457_v63 = vpop.eup %1456 }
 0x21f   :  { %v1459_v0 = vpop.eup %1458  ;;  %1092 = vst [vmem:[#allocation2 + $0x20] sm:$0xff] %v1457_v63 }
 0x220   :  { %1093 = vst [vmem:[#allocation2 + $0x28] sm:$0xff] %v1459_v0 }
 0x221   :  { %1471 = shalt.err (!%p1468_p4)
}
 0x222   :  { %s1472_s13 = scalar_lea.hbm %s1949_s5, 896 }
 0x223   :  { %p1473_p5 = scmp.ne.s32.totalorder %s1949_s5, %s1472_s13  ;;  %p1476_p6 = scmp.lt.u32.totalorder %s1472_s13, %s1949_s5 }
 0x225   :  { %p1478_p7 = pnand %p1476_p6, %p1473_p5 }
 0x227   :  { %1481 = shalt.err (!%p1478_p7)
}
 0x228   :  { %1105 = dma.vmem_to_hbm [thread:$0]  %s1103_s4, 896, %s1949_s5, [#allocation3]  }
 0x229   :  { %1482 = dma.done.wait [#allocation3], 896  }
 0x22a   :  { %1483 = vsyncadd [#allocation3], 4294966400 }
 0x22b   :  { %1109 = vsyncpa [#allocation3], 1 }

</bundles_post_ra>
